<compile_context>
chip_gen: v6e
topology: v6e:2x2x1
jax: 0.10.0
libtpu: 0.0.40
codegen_flags: <defaults>
</compile_context>

<pallas_src>
import jax
import jax.numpy as jnp
from jax import lax
from jax.experimental import pallas as pl
from jax.experimental.pallas import tpu as pltpu

NEG_INF = -1e12


def grcu_fused_kernel(w_ref, wut_ref, uht_ref, bt_ref, q0_ref,
                      x_ref, e_ref, h_ref, out_ref, q_scr):
    f32 = jnp.float32
    t = pl.program_id(0)

    @pl.when(t == 0)
    def _():
        q_scr[...] = q0_ref[...]      # Q^T = [alpha_x | alpha_e]^T   (2, 16)

    # ---------------- mat_GRU_cell_2 (transposed form: Qt is (2,16)) --------
    # activation(W1 @ Q + U @ hidden + b) == activation(Qt @ W1^T + hidden^T @ U^T + b^T)
    qt = q_scr[...]
    # Single fused MXU push for all Qt-driven gate matmuls:
    #   [W1u^T | W1r^T | W1h^T | Uu^T | Ur^T]  -> (16, 80)
    pre = jnp.dot(qt, wut_ref[...], preferred_element_type=f32)      # (2, 80)
    b = bt_ref[...]                                                  # (2, 48)
    update = jax.nn.sigmoid(pre[:, 0:16] + pre[:, 48:64] + b[:, 0:16])
    reset = jax.nn.sigmoid(pre[:, 16:32] + pre[:, 64:80] + b[:, 16:32])
    h_u = jnp.dot(reset * qt, uht_ref[...], preferred_element_type=f32)  # (2, 16)
    h_cap = jnp.tanh(pre[:, 32:48] + h_u + b[:, 32:48])
    qt_new = (1.0 - update) * qt + update * h_cap
    q_scr[...] = qt_new

    ax = qt_new[0:1, :]   # (1,16) == GCN_weights2[:, 0] (alpha_x), row form
    ae = qt_new[1:2, :]   # (1,16) == GCN_weights2[:, 1] (alpha_e), row form

    # ---------------- DA_HGAN ------------------------------------------------
    X = x_ref[0]          # (n, d)
    Ek = e_ref[0]         # (m, d)
    H = h_ref[0]          # (n, m)
    W = w_ref[...]        # (d, 8)

    def leaky(v):         # LeakyReLU(0.2)
        return jnp.where(v > 0.0, v, 0.2 * v)

    def elu(v):           # ELU(alpha=1)
        return jnp.where(v > 0.0, v, jnp.exp(v) - 1.0)

    def ab_t(a, b_):      # a @ b_.T  (contract last dims; no explicit transpose)
        return lax.dot_general(a, b_, (((1,), (1,)), ((), ())),
                               preferred_element_type=f32)

    def a0b0(a, b_):      # a.T @ b_  (contract leading dims; no explicit transpose)
        return lax.dot_general(a, b_, (((0,), (0,)), ((), ())),
                               preferred_element_type=f32)

    # --- densities -----------------------------------------------------------
    # TODO(synk): R_CB_Xi_create2 / w_r_bc_S2 / w_single_node2 are not defined
    # in the provided source; substitute the H-only co-occurrence density
    # (# of other nodes sharing >=1 hyperedge), in the spirit of node_density().
    co = ab_t(H, H)                                               # (n, n) = H @ H^T
    share = jnp.where(co > 0.0, 1.0, 0.0)                         # incl. self
    deg = jnp.sum(H, axis=1, keepdims=True)                       # (n, 1)
    self_share = jnp.where(deg > 0.0, 1.0, 0.0)                   # diag(co) > 0
    rho_x = jnp.sum(share, axis=1, keepdims=True) - self_share    # (n, 1)
    rho_e_row = a0b0(rho_x, H)                                    # (1, m) = (H^T rho_x)^T

    # --- shared projections ---------------------------------------------------
    WX = jnp.dot(X, W, preferred_element_type=f32)                # (n, 8)
    WE = jnp.dot(Ek, W, preferred_element_type=f32)               # (m, 8)

    # --- attention pass 1 (node=True): nodes -> hyperedges --------------------
    # rank-1 score: a_x[i,k] = WX[i]·ax[:8] + WE[k]·ax[8:]
    sx = ab_t(WX, ax[:, 0:8])                                     # (n, 1)
    se_row = ab_t(ax[:, 8:16], WE)                                # (1, m)
    a_x = leaky(sx + se_row)                                      # (n, m)
    rmin = jnp.min(rho_x, keepdims=True)
    rmax = jnp.max(rho_x, keepdims=True)
    rho_t = (rho_x - rmin) / (rmax - rmin) * jnp.max(a_x, keepdims=True)
    masked1 = jnp.where(H > 0.0, a_x + rho_t, NEG_INF)            # (n, m)
    p1 = jnp.exp(masked1 - jnp.max(masked1, axis=1, keepdims=True))
    att1 = p1 * pl.reciprocal(jnp.sum(p1, axis=1, keepdims=True), approx=True)
    E_new = elu(a0b0(att1, WX))                                   # (m, 8) = att1^T @ WX

    # --- attention pass 2 (node=False): hyperedges -> nodes --------------------
    # Work in the transposed (n, m) layout so the mask is H>0 directly and the
    # final contraction is a plain (n,m)@(m,8) matmul (original: att2^T @ E_new).
    te_row = ab_t(ae[:, 0:8], WE)                                 # (1, m)
    tx_col = ab_t(WX, ae[:, 8:16])                                # (n, 1)
    a_e_t = leaky(tx_col + te_row)                                # (n, m) == a_e^T
    emin = jnp.min(rho_e_row, keepdims=True)
    emax = jnp.max(rho_e_row, keepdims=True)
    rho_te = (rho_e_row - emin) / (emax - emin) * jnp.max(a_e_t, keepdims=True)
    masked2 = jnp.where(H > 0.0, a_e_t + rho_te, NEG_INF)         # (n, m)
    p2 = jnp.exp(masked2 - jnp.max(masked2, axis=0, keepdims=True))
    att2_t = p2 * pl.reciprocal(jnp.sum(p2, axis=0, keepdims=True), approx=True)
    out_ref[0] = elu(jnp.dot(att2_t, E_new,
                             preferred_element_type=f32)).astype(out_ref.dtype)


def grcu_forward(params, X, E, H):
    """GRCU forward (multi_head==1, layer!=1, flag2==0). Returns (T, n, 8)."""
    T, n, d = X.shape
    _, m, _ = E.shape
    n_out = params["W"].shape[1]

    # One-time host-side parameter packing (outside the time loop).
    W1, U, bb = params["gru2_W1"], params["gru2_U"], params["gru2_b"]
    # Fused Qt-side gate weights: [W1u^T | W1r^T | W1h^T | Uu^T | Ur^T] -> (16, 80)
    wut_all = jnp.concatenate(
        [W1[0].T, W1[1].T, W1[2].T, U[0].T, U[1].T], axis=1)          # (16, 80)
    uh_t = U[2].T                                                     # (16, 16)
    b_t = jnp.concatenate([bb[0].T, bb[1].T, bb[2].T], axis=1)        # (2, 48)
    # flag2 == 0: GCN_weights2 initialized from [alpha_x | alpha_e] (stored transposed).
    q0 = jnp.concatenate([params["alpha_x"], params["alpha_e"]], axis=1).T  # (2, 16)

    def const_spec(shape):
        nd = len(shape)
        return pl.BlockSpec(shape, lambda t, _nd=nd: (0,) * _nd)

    # Advisory cost estimate so XLA doesn't over-schedule around a tiny custom call.
    flops_step = 2 * (n * n * m + n * m + n * d * n_out + m * d * n_out
                      + 2 * (n + m) * n_out + 2 * n * m * n_out
                      + 2 * 16 * 80 + 2 * 16 * 16)
    trans_step = 2 * n * m + (n + m) * n_out + 6 * 2 * 16
    bytes_step = 4 * (n * d + m * d + n * m + n * n_out)
    param_bytes = 4 * (d * n_out + 16 * 80 + 16 * 16 + 2 * 48 + 2 * 16)

    return pl.pallas_call(
        grcu_fused_kernel,
        out_shape=jax.ShapeDtypeStruct((T, n, n_out), jnp.float32),
        grid=(T,),
        in_specs=[
            const_spec(params["W"].shape),                  # DA_HGAN W      (d, 8)
            const_spec(wut_all.shape),                      # [W1u|W1r|W1h|Uu|Ur]^T
            const_spec(uh_t.shape),                         # Uh^T
            const_spec(b_t.shape),                          # [bu|br|bh]^T
            const_spec(q0.shape),                           # initial Q^T
            pl.BlockSpec((1, n, d), lambda t: (t, 0, 0)),   # X_t
            pl.BlockSpec((1, m, d), lambda t: (t, 0, 0)),   # E_t
            pl.BlockSpec((1, n, m), lambda t: (t, 0, 0)),   # H_t
        ],
        out_specs=pl.BlockSpec((1, n, n_out), lambda t: (t, 0, 0)),
        scratch_shapes=[pltpu.VMEM((2, 16), jnp.float32)],  # Q carry across time
        compiler_params=pltpu.CompilerParams(
            dimension_semantics=("arbitrary",)),            # sequential: Q carry
        cost_estimate=pl.CostEstimate(
            flops=T * flops_step,
            transcendentals=T * trans_step,
            bytes_accessed=T * bytes_step + param_bytes),
    )(params["W"], wut_all, uh_t, b_t, q0, X, E, H)


if __name__ == "__main__":
    key = jax.random.PRNGKey(0)
    n, m, d, T = 16, 8, 32, 3            # nodes, hyperedges, in_features, timesteps
    ks = jax.random.split(key, 12)

    # Deterministic parameter init (shapes from the torch __init__s).
    params = {
        "W":        0.1 * jax.random.normal(ks[0], (d, 8), jnp.float32),      # DA_HGAN.W
        "alpha_x":  0.1 * jax.random.normal(ks[1], (16, 1), jnp.float32),     # DA_HGAN.alpha_x
        "alpha_e":  0.1 * jax.random.normal(ks[2], (16, 1), jnp.float32),     # DA_HGAN.alpha_e
        "gru2_W1":  0.1 * jax.random.normal(ks[3], (3, 16, 16), jnp.float32), # update/reset/htilda W1
        "gru2_U":   0.1 * jax.random.normal(ks[4], (3, 16, 16), jnp.float32), # update/reset/htilda U
        "gru2_b":   0.1 * jax.random.normal(ks[5], (3, 16, 2), jnp.float32),  # update/reset/htilda bias
    }

    Xs, Es, Hs = [], [], []
    for t in range(T):
        kx, ke, kh = jax.random.split(ks[6 + t], 3)
        Xs.append(jax.random.normal(kx, (n, d), jnp.float32))
        Es.append(jax.random.normal(ke, (m, d), jnp.float32))
        Hm = (jax.random.uniform(kh, (n, m)) > 0.5).astype(jnp.float32)
        # Make the incidence matrix non-degenerate (distinct densities so the
        # (rho - min)/(max - min) normalization in the reference is well-defined).
        Hm = Hm.at[0, :].set(1.0)        # node 0 in every hyperedge
        Hm = Hm.at[n - 1, :].set(0.0)    # node n-1 isolated
        Hm = Hm.at[1, 0].set(1.0)        # node 1 in hyperedge 0
        Hm = Hm.at[1:, m - 1].set(0.0)   # hyperedge m-1 contains only node 0
        Hm = Hm.at[0, m - 1].set(1.0)
        Hs.append(Hm)

    X = jnp.stack(Xs)        # (T, n, d)
    E = jnp.stack(Es)        # (T, m, d)
    H = jnp.stack(Hs)        # (T, n, m)

    out = jax.jit(grcu_forward)(params, X, E, H)
    out = jax.block_until_ready(out)
    assert out.shape == (T, n, 8)
    assert bool(jnp.all(jnp.isfinite(out)))
    print("KERNEL_OK")
</pallas_src>

<mosaic_0001>
module attributes {stable_mosaic.version = 11 : i64} {
  func.func @grcu_fused_kernel(%arg0: i32, %arg1: memref<32x8xf32, #tpu.memory_space<vmem>>, %arg2: memref<16x80xf32, #tpu.memory_space<vmem>>, %arg3: memref<16x16xf32, #tpu.memory_space<vmem>>, %arg4: memref<2x48xf32, #tpu.memory_space<vmem>>, %arg5: memref<2x16xf32, #tpu.memory_space<vmem>>, %arg6: memref<1x16x32xf32, #tpu.memory_space<vmem>>, %arg7: memref<1x8x32xf32, #tpu.memory_space<vmem>>, %arg8: memref<1x16x8xf32, #tpu.memory_space<vmem>>, %arg9: memref<1x16x8xf32, #tpu.memory_space<vmem>>, %arg10: memref<2x16xf32, #tpu.memory_space<vmem>>) attributes {dimension_semantics = [#tpu.dimension_semantics<arbitrary>], iteration_bounds = array<i64: 3>, scalar_prefetch = 0 : i64, scratch_operands = 1 : i64, tpu.core_type = #tpu.core_type<tc>, window_params = [{pipeline_mode = #tpu.pipeline_mode<synchronous>, transform_indices = @transform_0, window_bounds = array<i64: 32, 8>}, {pipeline_mode = #tpu.pipeline_mode<synchronous>, transform_indices = @transform_1, window_bounds = array<i64: 16, 80>}, {pipeline_mode = #tpu.pipeline_mode<synchronous>, transform_indices = @transform_2, window_bounds = array<i64: 16, 16>}, {pipeline_mode = #tpu.pipeline_mode<synchronous>, transform_indices = @transform_3, window_bounds = array<i64: 2, 48>}, {pipeline_mode = #tpu.pipeline_mode<synchronous>, transform_indices = @transform_4, window_bounds = array<i64: 2, 16>}, {transform_indices = @transform_5, window_bounds = array<i64: 1, 16, 32>}, {transform_indices = @transform_6, window_bounds = array<i64: 1, 8, 32>}, {transform_indices = @transform_7, window_bounds = array<i64: 1, 16, 8>}, {transform_indices = @transform_8, window_bounds = array<i64: 1, 16, 8>}]} {
    %c0_i32 = arith.constant 0 : i32
    %0 = arith.cmpi eq, %arg0, %c0_i32 : i32
    %1 = arith.extui %0 : i1 to i32
    %c0_i32_0 = arith.constant 0 : i32
    %2 = arith.cmpi ne, %1, %c0_i32_0 : i32
    scf.if %2 {
      %c0_68 = arith.constant 0 : index
      %c0_69 = arith.constant 0 : index
      %186 = vector.load %arg5[%c0_68, %c0_69] : memref<2x16xf32, #tpu.memory_space<vmem>>, vector<2x16xf32>
      %c0_70 = arith.constant 0 : index
      %c0_71 = arith.constant 0 : index
      %187 = vector.load %arg10[%c0_70, %c0_71] : memref<2x16xf32, #tpu.memory_space<vmem>>, vector<2x16xf32>
      tpu.vector_store %arg10[%c0_70, %c0_71], %186 {strides = array<i32>} : memref<2x16xf32, #tpu.memory_space<vmem>>, vector<2x16xf32>,
    } else {
    }
    %c0 = arith.constant 0 : index
    %c0_1 = arith.constant 0 : index
    %3 = vector.load %arg10[%c0, %c0_1] : memref<2x16xf32, #tpu.memory_space<vmem>>, vector<2x16xf32>
    %c0_2 = arith.constant 0 : index
    %c0_3 = arith.constant 0 : index
    %4 = vector.load %arg2[%c0_2, %c0_3] : memref<16x80xf32, #tpu.memory_space<vmem>>, vector<16x80xf32>
    %cst = arith.constant dense<0.000000e+00> : vector<2x80xf32>
    %5 = tpu.matmul %3, %4, %cst {dimension_numbers = #tpu.dot_dimension_numbers<[1], [0], [0], [1], [0, 0, 1, 1], [], []>} : vector<2x16xf32>, vector<16x80xf32>, vector<2x80xf32> -> vector<2x80xf32>
    %c0_4 = arith.constant 0 : index
    %c0_5 = arith.constant 0 : index
    %6 = vector.load %arg4[%c0_4, %c0_5] : memref<2x48xf32, #tpu.memory_space<vmem>>, vector<2x48xf32>
    %7 = vector.extract_strided_slice %5 {offsets = [0, 0], sizes = [2, 16], strides = [1, 1]} : vector<2x80xf32> to vector<2x16xf32>
    %8 = vector.extract_strided_slice %5 {offsets = [0, 48], sizes = [2, 16], strides = [1, 1]} : vector<2x80xf32> to vector<2x16xf32>
    %9 = arith.addf %7, %8 : vector<2x16xf32>
    %10 = vector.extract_strided_slice %6 {offsets = [0, 0], sizes = [2, 16], strides = [1, 1]} : vector<2x48xf32> to vector<2x16xf32>
    %11 = arith.addf %9, %10 : vector<2x16xf32>
    %12 = arith.negf %11 : vector<2x16xf32>
    %13 = math.exp %12 : vector<2x16xf32>
    %cst_6 = arith.constant 1.000000e+00 : f32
    %14 = vector.broadcast %cst_6 : f32 to vector<2x16xf32>
    %15 = arith.addf %14, %13 : vector<2x16xf32>
    %16 = arith.divf %14, %15 : vector<2x16xf32>
    %17 = vector.extract_strided_slice %5 {offsets = [0, 16], sizes = [2, 16], strides = [1, 1]} : vector<2x80xf32> to vector<2x16xf32>
    %18 = vector.extract_strided_slice %5 {offsets = [0, 64], sizes = [2, 16], strides = [1, 1]} : vector<2x80xf32> to vector<2x16xf32>
    %19 = arith.addf %17, %18 : vector<2x16xf32>
    %20 = vector.extract_strided_slice %6 {offsets = [0, 16], sizes = [2, 16], strides = [1, 1]} : vector<2x48xf32> to vector<2x16xf32>
    %21 = arith.addf %19, %20 : vector<2x16xf32>
    %22 = arith.negf %21 : vector<2x16xf32>
    %23 = math.exp %22 : vector<2x16xf32>
    %cst_7 = arith.constant 1.000000e+00 : f32
    %24 = vector.broadcast %cst_7 : f32 to vector<2x16xf32>
    %25 = arith.addf %24, %23 : vector<2x16xf32>
    %26 = arith.divf %24, %25 : vector<2x16xf32>
    %27 = arith.mulf %26, %3 : vector<2x16xf32>
    %c0_8 = arith.constant 0 : index
    %c0_9 = arith.constant 0 : index
    %28 = vector.load %arg3[%c0_8, %c0_9] : memref<16x16xf32, #tpu.memory_space<vmem>>, vector<16x16xf32>
    %cst_10 = arith.constant dense<0.000000e+00> : vector<2x16xf32>
    %29 = tpu.matmul %27, %28, %cst_10 {dimension_numbers = #tpu.dot_dimension_numbers<[1], [0], [0], [1], [0, 0, 1, 1], [], []>} : vector<2x16xf32>, vector<16x16xf32>, vector<2x16xf32> -> vector<2x16xf32>
    %30 = vector.extract_strided_slice %5 {offsets = [0, 32], sizes = [2, 16], strides = [1, 1]} : vector<2x80xf32> to vector<2x16xf32>
    %31 = arith.addf %30, %29 : vector<2x16xf32>
    %32 = vector.extract_strided_slice %6 {offsets = [0, 32], sizes = [2, 16], strides = [1, 1]} : vector<2x48xf32> to vector<2x16xf32>
    %33 = arith.addf %31, %32 : vector<2x16xf32>
    %34 = math.tanh %33 : vector<2x16xf32>
    %cst_11 = arith.constant 1.000000e+00 : f32
    %35 = vector.broadcast %cst_11 : f32 to vector<2x16xf32>
    %36 = arith.subf %35, %16 : vector<2x16xf32>
    %37 = arith.mulf %36, %3 : vector<2x16xf32>
    %38 = arith.mulf %16, %34 : vector<2x16xf32>
    %39 = arith.addf %37, %38 : vector<2x16xf32>
    %c0_12 = arith.constant 0 : index
    %c0_13 = arith.constant 0 : index
    %40 = vector.load %arg10[%c0_12, %c0_13] : memref<2x16xf32, #tpu.memory_space<vmem>>, vector<2x16xf32>
    tpu.vector_store %arg10[%c0_12, %c0_13], %39 {strides = array<i32>} : memref<2x16xf32, #tpu.memory_space<vmem>>, vector<2x16xf32>,
    %41 = vector.extract_strided_slice %39 {offsets = [0, 0], sizes = [1, 16], strides = [1, 1]} : vector<2x16xf32> to vector<1x16xf32>
    %42 = vector.extract_strided_slice %39 {offsets = [1, 0], sizes = [1, 16], strides = [1, 1]} : vector<2x16xf32> to vector<1x16xf32>
    %c0_14 = arith.constant 0 : index
    %c0_15 = arith.constant 0 : index
    %c0_16 = arith.constant 0 : index
    %43 = vector.load %arg6[%c0_14, %c0_15, %c0_16] : memref<1x16x32xf32, #tpu.memory_space<vmem>>, vector<1x16x32xf32>
    %44 = vector.shape_cast %43 : vector<1x16x32xf32> to vector<16x32xf32>
    %c0_17 = arith.constant 0 : index
    %c0_18 = arith.constant 0 : index
    %c0_19 = arith.constant 0 : index
    %45 = vector.load %arg7[%c0_17, %c0_18, %c0_19] : memref<1x8x32xf32, #tpu.memory_space<vmem>>, vector<1x8x32xf32>
    %46 = vector.shape_cast %45 : vector<1x8x32xf32> to vector<8x32xf32>
    %c0_20 = arith.constant 0 : index
    %c0_21 = arith.constant 0 : index
    %c0_22 = arith.constant 0 : index
    %47 = vector.load %arg8[%c0_20, %c0_21, %c0_22] : memref<1x16x8xf32, #tpu.memory_space<vmem>>, vector<1x16x8xf32>
    %48 = vector.shape_cast %47 : vector<1x16x8xf32> to vector<16x8xf32>
    %c0_23 = arith.constant 0 : index
    %c0_24 = arith.constant 0 : index
    %49 = vector.load %arg1[%c0_23, %c0_24] : memref<32x8xf32, #tpu.memory_space<vmem>>, vector<32x8xf32>
    %cst_25 = arith.constant dense<0.000000e+00> : vector<16x16xf32>
    %50 = tpu.matmul %48, %48, %cst_25 {dimension_numbers = #tpu.dot_dimension_numbers<[1], [1], [0], [0], [0, 0, 1, 0], [], []>} : vector<16x8xf32>, vector<16x8xf32>, vector<16x16xf32> -> vector<16x16xf32>
    %cst_26 = arith.constant 0.000000e+00 : f32
    %51 = vector.broadcast %cst_26 : f32 to vector<16x16xf32>
    %52 = arith.cmpf ogt, %50, %51 : vector<16x16xf32>
    %cst_27 = arith.constant 1.000000e+00 : f32
    %cst_28 = arith.constant 0.000000e+00 : f32
    %53 = vector.broadcast %cst_27 : f32 to vector<16x16xf32>
    %54 = vector.broadcast %cst_28 : f32 to vector<16x16xf32>
    %55 = arith.select %52, %53, %54 : vector<16x16xi1>, vector<16x16xf32>
    %cst_29 = arith.constant dense<0.000000e+00> : vector<16xf32>
    %56 = vector.multi_reduction <add>, %48, %cst_29 [1] : vector<16x8xf32> to vector<16xf32>
    %57 = vector.shape_cast %56 : vector<16xf32> to vector<16x1xf32>
    %cst_30 = arith.constant 0.000000e+00 : f32
    %58 = vector.broadcast %cst_30 : f32 to vector<16x1xf32>
    %59 = arith.cmpf ogt, %57, %58 : vector<16x1xf32>
    %cst_31 = arith.constant 1.000000e+00 : f32
    %cst_32 = arith.constant 0.000000e+00 : f32
    %60 = vector.broadcast %cst_31 : f32 to vector<16x1xf32>
    %61 = vector.broadcast %cst_32 : f32 to vector<16x1xf32>
    %62 = arith.select %59, %60, %61 : vector<16x1xi1>, vector<16x1xf32>
    %cst_33 = arith.constant dense<0.000000e+00> : vector<16xf32>
    %63 = vector.multi_reduction <add>, %55, %cst_33 [1] : vector<16x16xf32> to vector<16xf32>
    %64 = vector.shape_cast %63 : vector<16xf32> to vector<16x1xf32>
    %65 = arith.subf %64, %62 : vector<16x1xf32>
    %cst_34 = arith.constant dense<0.000000e+00> : vector<1x8xf32>
    %66 = tpu.matmul %65, %48, %cst_34 {dimension_numbers = #tpu.dot_dimension_numbers<[0], [0], [1], [1], [0, 1, 1, 1], [], []>} : vector<16x1xf32>, vector<16x8xf32>, vector<1x8xf32> -> vector<1x8xf32>
    %cst_35 = arith.constant dense<0.000000e+00> : vector<16x8xf32>
    %67 = tpu.matmul %44, %49, %cst_35 {dimension_numbers = #tpu.dot_dimension_numbers<[1], [0], [0], [1], [0, 0, 1, 1], [], []>} : vector<16x32xf32>, vector<32x8xf32>, vector<16x8xf32> -> vector<16x8xf32>
    %cst_36 = arith.constant dense<0.000000e+00> : vector<8x8xf32>
    %68 = tpu.matmul %46, %49, %cst_36 {dimension_numbers = #tpu.dot_dimension_numbers<[1], [0], [0], [1], [0, 0, 1, 1], [], []>} : vector<8x32xf32>, vector<32x8xf32>, vector<8x8xf32> -> vector<8x8xf32>
    %69 = vector.extract_strided_slice %41 {offsets = [0, 0], sizes = [1, 8], strides = [1, 1]} : vector<1x16xf32> to vector<1x8xf32>
    %cst_37 = arith.constant dense<0.000000e+00> : vector<16x1xf32>
    %70 = tpu.matmul %67, %69, %cst_37 {dimension_numbers = #tpu.dot_dimension_numbers<[1], [1], [0], [0], [0, 0, 1, 0], [], []>} : vector<16x8xf32>, vector<1x8xf32>, vector<16x1xf32> -> vector<16x1xf32>
    %71 = vector.extract_strided_slice %41 {offsets = [0, 8], sizes = [1, 8], strides = [1, 1]} : vector<1x16xf32> to vector<1x8xf32>
    %cst_38 = arith.constant dense<0.000000e+00> : vector<1x8xf32>
    %72 = tpu.matmul %71, %68, %cst_38 {dimension_numbers = #tpu.dot_dimension_numbers<[1], [1], [0], [0], [0, 0, 1, 0], [], []>} : vector<1x8xf32>, vector<8x8xf32>, vector<1x8xf32> -> vector<1x8xf32>
    %73 = vector.broadcast %70 : vector<16x1xf32> to vector<16x8xf32>
    %74 = vector.broadcast %72 : vector<1x8xf32> to vector<16x8xf32>
    %75 = arith.addf %73, %74 : vector<16x8xf32>
    %cst_39 = arith.constant 0.000000e+00 : f32
    %76 = vector.broadcast %cst_39 : f32 to vector<16x8xf32>
    %77 = arith.cmpf ogt, %75, %76 : vector<16x8xf32>
    %cst_40 = arith.constant 2.000000e-01 : f32
    %78 = vector.broadcast %cst_40 : f32 to vector<16x8xf32>
    %79 = arith.mulf %78, %75 : vector<16x8xf32>
    %80 = arith.select %77, %75, %79 : vector<16x8xi1>, vector<16x8xf32>
    %81 = vector.shape_cast %65 : vector<16x1xf32> to vector<1x16x1xf32>
    %cst_41 = arith.constant dense<0x7F800000> : vector<1xf32>
    %82 = vector.multi_reduction <minimumf>, %81, %cst_41 [1, 2] : vector<1x16x1xf32> to vector<1xf32>
    %83 = vector.shape_cast %82 : vector<1xf32> to vector<1x1x1xf32>
    %84 = vector.extract %83[0, 0, 0] : f32 from vector<1x1x1xf32>
    %85 = vector.broadcast %84 : f32 to vector<1x1xf32>
    %86 = vector.shape_cast %65 : vector<16x1xf32> to vector<1x16x1xf32>
    %cst_42 = arith.constant dense<0xFF800000> : vector<1xf32>
    %87 = vector.multi_reduction <maximumf>, %86, %cst_42 [1, 2] : vector<1x16x1xf32> to vector<1xf32>
    %88 = vector.shape_cast %87 : vector<1xf32> to vector<1x1x1xf32>
    %89 = vector.extract %88[0, 0, 0] : f32 from vector<1x1x1xf32>
    %90 = vector.broadcast %89 : f32 to vector<1x1xf32>
    %91 = vector.broadcast %85 : vector<1x1xf32> to vector<16x1xf32>
    %92 = arith.subf %65, %91 : vector<16x1xf32>
    %93 = arith.subf %90, %85 : vector<1x1xf32>
    %94 = vector.broadcast %93 : vector<1x1xf32> to vector<16x1xf32>
    %95 = arith.divf %92, %94 : vector<16x1xf32>
    %96 = vector.shape_cast %80 : vector<16x8xf32> to vector<1x16x8xf32>
    %cst_43 = arith.constant dense<0xFF800000> : vector<1xf32>
    %97 = vector.multi_reduction <maximumf>, %96, %cst_43 [1, 2] : vector<1x16x8xf32> to vector<1xf32>
    %98 = vector.shape_cast %97 : vector<1xf32> to vector<1x1x1xf32>
    %99 = vector.extract %98[0, 0, 0] : f32 from vector<1x1x1xf32>
    %100 = vector.broadcast %99 : f32 to vector<1x1xf32>
    %101 = vector.broadcast %100 : vector<1x1xf32> to vector<16x1xf32>
    %102 = arith.mulf %95, %101 : vector<16x1xf32>
    %cst_44 = arith.constant 0.000000e+00 : f32
    %103 = vector.broadcast %cst_44 : f32 to vector<16x8xf32>
    %104 = arith.cmpf ogt, %48, %103 : vector<16x8xf32>
    %105 = vector.broadcast %102 : vector<16x1xf32> to vector<16x8xf32>
    %106 = arith.addf %80, %105 : vector<16x8xf32>
    %cst_45 = arith.constant -9.99999995E+11 : f32
    %107 = vector.broadcast %cst_45 : f32 to vector<16x8xf32>
    %108 = arith.select %104, %106, %107 : vector<16x8xi1>, vector<16x8xf32>
    %cst_46 = arith.constant dense<0xFF800000> : vector<16xf32>
    %109 = vector.multi_reduction <maximumf>, %108, %cst_46 [1] : vector<16x8xf32> to vector<16xf32>
    %110 = vector.shape_cast %109 : vector<16xf32> to vector<16x1xf32>
    %111 = vector.broadcast %110 : vector<16x1xf32> to vector<16x8xf32>
    %112 = arith.subf %108, %111 : vector<16x8xf32>
    %113 = math.exp %112 : vector<16x8xf32>
    %cst_47 = arith.constant dense<0.000000e+00> : vector<16xf32>
    %114 = vector.multi_reduction <add>, %113, %cst_47 [1] : vector<16x8xf32> to vector<16xf32>
    %115 = vector.shape_cast %114 : vector<16xf32> to vector<16x1xf32>
    %116 = tpu.reciprocal %115 {approx = true} : vector<16x1xf32> -> vector<16x1xf32>
    %117 = vector.broadcast %116 : vector<16x1xf32> to vector<16x8xf32>
    %118 = arith.mulf %113, %117 : vector<16x8xf32>
    %cst_48 = arith.constant dense<0.000000e+00> : vector<8x8xf32>
    %119 = tpu.matmul %118, %67, %cst_48 {dimension_numbers = #tpu.dot_dimension_numbers<[0], [0], [1], [1], [0, 1, 1, 1], [], []>} : vector<16x8xf32>, vector<16x8xf32>, vector<8x8xf32> -> vector<8x8xf32>
    %cst_49 = arith.constant 0.000000e+00 : f32
    %120 = vector.broadcast %cst_49 : f32 to vector<8x8xf32>
    %121 = arith.cmpf ogt, %119, %120 : vector<8x8xf32>
    %122 = math.exp %119 : vector<8x8xf32>
    %cst_50 = arith.constant 1.000000e+00 : f32
    %123 = vector.broadcast %cst_50 : f32 to vector<8x8xf32>
    %124 = arith.subf %122, %123 : vector<8x8xf32>
    %125 = arith.select %121, %119, %124 : vector<8x8xi1>, vector<8x8xf32>
    %126 = vector.extract_strided_slice %42 {offsets = [0, 0], sizes = [1, 8], strides = [1, 1]} : vector<1x16xf32> to vector<1x8xf32>
    %cst_51 = arith.constant dense<0.000000e+00> : vector<1x8xf32>
    %127 = tpu.matmul %126, %68, %cst_51 {dimension_numbers = #tpu.dot_dimension_numbers<[1], [1], [0], [0], [0, 0, 1, 0], [], []>} : vector<1x8xf32>, vector<8x8xf32>, vector<1x8xf32> -> vector<1x8xf32>
    %128 = vector.extract_strided_slice %42 {offsets = [0, 8], sizes = [1, 8], strides = [1, 1]} : vector<1x16xf32> to vector<1x8xf32>
    %cst_52 = arith.constant dense<0.000000e+00> : vector<16x1xf32>
    %129 = tpu.matmul %67, %128, %cst_52 {dimension_numbers = #tpu.dot_dimension_numbers<[1], [1], [0], [0], [0, 0, 1, 0], [], []>} : vector<16x8xf32>, vector<1x8xf32>, vector<16x1xf32> -> vector<16x1xf32>
    %130 = vector.broadcast %129 : vector<16x1xf32> to vector<16x8xf32>
    %131 = vector.broadcast %127 : vector<1x8xf32> to vector<16x8xf32>
    %132 = arith.addf %130, %131 : vector<16x8xf32>
    %cst_53 = arith.constant 0.000000e+00 : f32
    %133 = vector.broadcast %cst_53 : f32 to vector<16x8xf32>
    %134 = arith.cmpf ogt, %132, %133 : vector<16x8xf32>
    %cst_54 = arith.constant 2.000000e-01 : f32
    %135 = vector.broadcast %cst_54 : f32 to vector<16x8xf32>
    %136 = arith.mulf %135, %132 : vector<16x8xf32>
    %137 = arith.select %134, %132, %136 : vector<16x8xi1>, vector<16x8xf32>
    %138 = vector.shape_cast %66 : vector<1x8xf32> to vector<1x1x8xf32>
    %cst_55 = arith.constant dense<0x7F800000> : vector<1xf32>
    %139 = vector.multi_reduction <minimumf>, %138, %cst_55 [1, 2] : vector<1x1x8xf32> to vector<1xf32>
    %140 = vector.shape_cast %139 : vector<1xf32> to vector<1x1x1xf32>
    %141 = vector.extract %140[0, 0, 0] : f32 from vector<1x1x1xf32>
    %142 = vector.broadcast %141 : f32 to vector<1x1xf32>
    %143 = vector.shape_cast %66 : vector<1x8xf32> to vector<1x1x8xf32>
    %cst_56 = arith.constant dense<0xFF800000> : vector<1xf32>
    %144 = vector.multi_reduction <maximumf>, %143, %cst_56 [1, 2] : vector<1x1x8xf32> to vector<1xf32>
    %145 = vector.shape_cast %144 : vector<1xf32> to vector<1x1x1xf32>
    %146 = vector.extract %145[0, 0, 0] : f32 from vector<1x1x1xf32>
    %147 = vector.broadcast %146 : f32 to vector<1x1xf32>
    %148 = vector.broadcast %142 : vector<1x1xf32> to vector<1x8xf32>
    %149 = arith.subf %66, %148 : vector<1x8xf32>
    %150 = arith.subf %147, %142 : vector<1x1xf32>
    %151 = vector.broadcast %150 : vector<1x1xf32> to vector<1x8xf32>
    %152 = arith.divf %149, %151 : vector<1x8xf32>
    %153 = vector.shape_cast %137 : vector<16x8xf32> to vector<1x16x8xf32>
    %cst_57 = arith.constant dense<0xFF800000> : vector<1xf32>
    %154 = vector.multi_reduction <maximumf>, %153, %cst_57 [1, 2] : vector<1x16x8xf32> to vector<1xf32>
    %155 = vector.shape_cast %154 : vector<1xf32> to vector<1x1x1xf32>
    %156 = vector.extract %155[0, 0, 0] : f32 from vector<1x1x1xf32>
    %157 = vector.broadcast %156 : f32 to vector<1x1xf32>
    %158 = vector.broadcast %157 : vector<1x1xf32> to vector<1x8xf32>
    %159 = arith.mulf %152, %158 : vector<1x8xf32>
    %cst_58 = arith.constant 0.000000e+00 : f32
    %160 = vector.broadcast %cst_58 : f32 to vector<16x8xf32>
    %161 = arith.cmpf ogt, %48, %160 : vector<16x8xf32>
    %162 = vector.broadcast %159 : vector<1x8xf32> to vector<16x8xf32>
    %163 = arith.addf %137, %162 : vector<16x8xf32>
    %cst_59 = arith.constant -9.99999995E+11 : f32
    %164 = vector.broadcast %cst_59 : f32 to vector<16x8xf32>
    %165 = arith.select %161, %163, %164 : vector<16x8xi1>, vector<16x8xf32>
    %cst_60 = arith.constant dense<0xFF800000> : vector<8xf32>
    %166 = vector.multi_reduction <maximumf>, %165, %cst_60 [0] : vector<16x8xf32> to vector<8xf32>
    %167 = vector.shape_cast %166 : vector<8xf32> to vector<1x8xf32>
    %168 = vector.broadcast %167 : vector<1x8xf32> to vector<16x8xf32>
    %169 = arith.subf %165, %168 : vector<16x8xf32>
    %170 = math.exp %169 : vector<16x8xf32>
    %cst_61 = arith.constant dense<0.000000e+00> : vector<8xf32>
    %171 = vector.multi_reduction <add>, %170, %cst_61 [0] : vector<16x8xf32> to vector<8xf32>
    %172 = vector.shape_cast %171 : vector<8xf32> to vector<1x8xf32>
    %173 = tpu.reciprocal %172 {approx = true} : vector<1x8xf32> -> vector<1x8xf32>
    %174 = vector.broadcast %173 : vector<1x8xf32> to vector<16x8xf32>
    %175 = arith.mulf %170, %174 : vector<16x8xf32>
    %cst_62 = arith.constant dense<0.000000e+00> : vector<16x8xf32>
    %176 = tpu.matmul %175, %125, %cst_62 {dimension_numbers = #tpu.dot_dimension_numbers<[1], [0], [0], [1], [0, 0, 1, 1], [], []>} : vector<16x8xf32>, vector<8x8xf32>, vector<16x8xf32> -> vector<16x8xf32>
    %cst_63 = arith.constant 0.000000e+00 : f32
    %177 = vector.broadcast %cst_63 : f32 to vector<16x8xf32>
    %178 = arith.cmpf ogt, %176, %177 : vector<16x8xf32>
    %179 = math.exp %176 : vector<16x8xf32>
    %cst_64 = arith.constant 1.000000e+00 : f32
    %180 = vector.broadcast %cst_64 : f32 to vector<16x8xf32>
    %181 = arith.subf %179, %180 : vector<16x8xf32>
    %182 = arith.select %178, %176, %181 : vector<16x8xi1>, vector<16x8xf32>
    %c0_65 = arith.constant 0 : index
    %c0_66 = arith.constant 0 : index
    %c0_67 = arith.constant 0 : index
    %183 = vector.load %arg9[%c0_65, %c0_66, %c0_67] : memref<1x16x8xf32, #tpu.memory_space<vmem>>, vector<1x16x8xf32>
    %184 = vector.shape_cast %183 : vector<1x16x8xf32> to vector<16x8xf32>
    %185 = vector.shape_cast %182 : vector<16x8xf32> to vector<1x16x8xf32>
    tpu.vector_store %arg9[%c0_65, %c0_66, %c0_67], %185 {strides = array<i32>} : memref<1x16x8xf32, #tpu.memory_space<vmem>>, vector<1x16x8xf32>,
    return
  }
  func.func @transform_0(%arg0: i32) -> (i32, i32) {
    %c0_i32 = arith.constant 0 : i32
    %c0_i32_0 = arith.constant 0 : i32
    %c0_i32_1 = arith.constant 0 : i32
    return %c0_i32, %c0_i32_0 : i32, i32
  }
  func.func @transform_1(%arg0: i32) -> (i32, i32) {
    %c0_i32 = arith.constant 0 : i32
    %c0_i32_0 = arith.constant 0 : i32
    %c0_i32_1 = arith.constant 0 : i32
    return %c0_i32, %c0_i32_0 : i32, i32
  }
  func.func @transform_2(%arg0: i32) -> (i32, i32) {
    %c0_i32 = arith.constant 0 : i32
    %c0_i32_0 = arith.constant 0 : i32
    %c0_i32_1 = arith.constant 0 : i32
    return %c0_i32, %c0_i32_0 : i32, i32
  }
  func.func @transform_3(%arg0: i32) -> (i32, i32) {
    %c0_i32 = arith.constant 0 : i32
    %c0_i32_0 = arith.constant 0 : i32
    %c0_i32_1 = arith.constant 0 : i32
    return %c0_i32, %c0_i32_0 : i32, i32
  }
  func.func @transform_4(%arg0: i32) -> (i32, i32) {
    %c0_i32 = arith.constant 0 : i32
    %c0_i32_0 = arith.constant 0 : i32
    %c0_i32_1 = arith.constant 0 : i32
    return %c0_i32, %c0_i32_0 : i32, i32
  }
  func.func @transform_5(%arg0: i32) -> (i32, i32, i32) {
    %c0_i32 = arith.constant 0 : i32
    %c0_i32_0 = arith.constant 0 : i32
    %c0_i32_1 = arith.constant 0 : i32
    return %arg0, %c0_i32, %c0_i32_0 : i32, i32, i32
  }
  func.func @transform_6(%arg0: i32) -> (i32, i32, i32) {
    %c0_i32 = arith.constant 0 : i32
    %c0_i32_0 = arith.constant 0 : i32
    %c0_i32_1 = arith.constant 0 : i32
    return %arg0, %c0_i32, %c0_i32_0 : i32, i32, i32
  }
  func.func @transform_7(%arg0: i32) -> (i32, i32, i32) {
    %c0_i32 = arith.constant 0 : i32
    %c0_i32_0 = arith.constant 0 : i32
    %c0_i32_1 = arith.constant 0 : i32
    return %arg0, %c0_i32, %c0_i32_0 : i32, i32, i32
  }
  func.func @transform_8(%arg0: i32) -> (i32, i32, i32) {
    %c0_i32 = arith.constant 0 : i32
    %c0_i32_0 = arith.constant 0 : i32
    %c0_i32_1 = arith.constant 0 : i32
    return %arg0, %c0_i32, %c0_i32_0 : i32, i32, i32
  }
}

</mosaic_0001>

<bundles_post_ra>
// kernel: grcu_forward.1
= control target key start
LH: loop header
LB: loop body
LE: loop exit
PB: predicated region body
PF: predicated region fallthrough
CT: control target
= control target key end

     0   :  { %s1803_s27 = smov 0   ;;  %s2048_s0 = inlined_call_operand.vmem [shape: f32[32,8], index: 0, kind: input, shape index: {}]   ;;  %s2049_s1 = inlined_call_operand.vmem [shape: f32[16,80], index: 1, kind: input, shape index: {}]   ;;  %s2050_s2 = inlined_call_operand.vmem [shape: f32[16,16], index: 2, kind: input, shape index: {}]   ;;  %s2051_s3 = inlined_call_operand.vmem [shape: f32[2,48], index: 3, kind: input, shape index: {}]   ;;  %s2052_s4 = inlined_call_operand.vmem [shape: f32[2,16], index: 4, kind: input, shape index: {}]   ;;  %s2053_s5 = inlined_call_operand.vmem [shape: f32[3,16,32], index: 5, kind: input, shape index: {}]   ;;  %s2054_s6 = inlined_call_operand.vmem [shape: f32[3,8,32], index: 6, kind: input, shape index: {}]   ;;  %s2055_s7 = inlined_call_operand.vmem [shape: f32[3,16,8], index: 7, kind: input, shape index: {}]   ;;  %s2056_s8 = inlined_call_operand.vmem [shape: f32[3,16,8], index: 8, kind: output, shape index: {}]  }
   0x1 LB: > { %s1539_s28 = sadd.s32 4294967295, %s1748_s27   ;;  %p1543_p0 = scmp.ge.s32.totalorder %s1748_s27, 1  ;;  %s1748_s27 = sphi %s1803_s27, %s18_s27  }
   0x2   : > { %p281_p1 = scmp.lt.s32.totalorder %s1748_s27, 4 }
   0x4   : > { %p282_p2 = pnand %p1543_p0, %p281_p1 }
   0x5   : > { %p324_p3 = scmp.lt.s32.totalorder (!%p282_p2), %s1539_s28, 2  ;;  %p1551_p4 = scmp.ne.s32.totalorder (!%p282_p2), %s1539_s28, 0 }
   0x6   : > { %285 = sbr.rel (%p282_p2) target bundleno = 2403 (0x963), region = 52 }
   0xb   : > { %s325_s29 = scalar_select %p324_p3, %s1539_s28, 2 }
   0xc   : > { %346 = sbr.rel (%p1551_p4) target bundleno = 19 (0x13), region = 56 }
   0xd   : > { %s1575_s30 = sshll.u32 %s325_s29, 4  ;;  %s1546_s9 = sshll.u32 %s325_s29, 3 }
   0xe   : > { %s1814_s12 = scalar_lea.vmem %s2053_s5, %s1575_s30  ;;  %s1819_s15 = scalar_lea.vmem %s2054_s6, %s1546_s9 }
   0xf   : > { %s1824_s18 = scalar_lea.vmem %s2055_s7, %s1575_s30  ;;  %s1829_s21 = scalar_lea.vmem %s2056_s8, %s1575_s30 }
  0x11   : > { %v347_v0 = vld [vmem:[%s2052_s4] sm:$0x3]  ;;  %vm348_vm0 = vcmask 123904  }
  0x12   : > { %349 = vst.msk [vmem:[#allocation2] sm:$0x3] %vm348_vm0, %v347_v0 }
  0x13 PF: > { %v352_v1 = vld [vmem:[%s2049_s1 + $0x8] sm:$0xff]  ;;  %v1750_v2 = vmov 0.0   ;;  %v351_v3 = vld [vmem:[%s2049_s1] sm:$0xff]  ;;  %vm1751_vm1 = vmmov 0   ;;  %vm353_vm2 = vcmask 130048   ;;  %s1752_s28 = smov 80  }
  0x14   : > { %1612 = vmatprep.subr.mxu0 %v1750_v2  ;;  %1616 = vmatprep.mubr.msk.f32.mxu0 %vm1751_vm1, %v1750_v2  ;;  %s1753_s30 = smov 16   ;;  %v445_v7 = vld [vmem:[%s2050_s2 + $0x8] sm:$0xff]  ;;  %v444_v8 = vld [vmem:[%s2050_s2] sm:$0xff]  ;;  %vm547_vm3 = vcmask 64512   ;;  %s1754_s17 = smov 112   ;;  %v1909_v31 = vld [vmem:[%s2048_s0 + $0x18] sm:$0xff] }
  0x15   : > { %1613 = vmatpush3.msra.mxu0 %v352_v1  ;;  %1619 = vmatprep.subr.mxu1 %v1750_v2  ;;  %v1866_v9 = vld [vmem:[%s2051_s3] sm:$0x3]  ;;  %v1871_v16 = vld [vmem:[%s1824_s18 + $0x8] sm:$0xff]  ;;  %v1914_v32 = vld [vmem:[%s2048_s0 + $0x10] sm:$0xff]  ;;  %vm756_vm6 = vcmask 261120   ;;  %v911_v1 = vlaneseq  ;;  %vm536_vm9 = vcmask 123904  }
  0x16   : > { %1614 = vmatprep.subr.mxu0 %v1750_v2  ;;  %1623 = vmatprep.mubr.msk.f32.mxu1 %vm1751_vm1, %v1750_v2  ;;  %v1874_v17 = vld [vmem:[%s1824_s18] sm:$0xff]  ;;  %s1755_s18 = smov 32   ;;  %v1922_v33 = vld [vmem:[%s2048_s0 + $0x8] sm:$0xff]  ;;  %v636_v40 = vsel %vm547_vm3, %v1871_v16, 0.0  ;;  %vm1053_vm13 = vcmp.gt.f32.partialorder %v1871_v16, 0.0  ;;  %vm1291_vm14 = vcmask 57344  }
  0x17   : > { %1615 = vmatpush3.msra.mxu0 %v351_v3  ;;  %1620 = vmatpush3.msra.mxu1 %v445_v7  ;;  %v633_v22 = vsel %vm547_vm3, %v1874_v17, 0.0  ;;  %v1929_v34 = vld [vmem:[%s2048_s0] sm:$0xff]  ;;  %vm1052_vm12 = vcmp.gt.f32.partialorder %v1874_v17, 0.0 }
  0x18   : > { %1621 = vmatprep.subr.mxu1 %v1750_v2  ;;  %1626 = vmatprep.subr.msk.mxu0 %vm547_vm3, %v1871_v16  ;;  %v540_v35 = vld [vmem:[%s1819_s15] sm:$0xff]  ;;  %s1756_s15 = smov 96  }
  0x19   : > { %v1843_v4 = vld [vmem:[#allocation2] sm:$0x3]  ;;  %1622 = vmatpush3.msra.mxu1 %v444_v8 }
  0x1a   : > { %1617 = vmatmul.mubr.msk.f32.vlgmr.msra.gmra.mxu0 %vm353_vm2, %v1843_v4  ;;  %1633 = vmatprep.subr.mxu1 %v1750_v2 }
  0x1b   : > { %1630 = vmatprep.mubr.msk.f32.mxu0 %vm547_vm3, %v1874_v17  ;;  %1627 = vmatpush3.xpose.msk.msra.mxu0 %vm547_vm3, %v1871_v16 }
  0x1c   : > { %1628 = vmatprep.subr.msk.mxu0 %vm547_vm3, %v1874_v17 }
  0x1f   : > { %1629 = vmatpush3.xpose.msk.msra.mxu0 %vm547_vm3, %v1874_v17 }
  0x20   : > { %1651 = vmatprep.subr.mxu0 %v1750_v2 }
  0x22   : > { %1631 = vmatmul.mubr.msk.f32.vlgmr.msra.gmra.mxu0 %vm547_vm3, %v1871_v16 }
  0x23   : > { %1659 = vmatprep.mubr.msk.f32.mxu0 %vm1751_vm1, %v1750_v2  ;;  %1652 = vmatpush3.msra.mxu0 %v1909_v31 }
  0x24   : > { %1653 = vmatprep.subr.mxu0 %v1750_v2 }
  0x25   : > { %1654 = vmatpush3.msra.mxu0 %v1914_v32 }
  0x26   : > { %1655 = vmatprep.subr.mxu0 %v1750_v2 }
  0x27   : > { %1656 = vmatpush3.msra.mxu0 %v1922_v33 }
  0x28   : > { %1657 = vmatprep.subr.mxu0 %v1750_v2 }
  0x29   : > { %1658 = vmatpush3.msra.mxu0 %v1929_v34 }
  0x2a   : > { %1660 = vmatmul.mubr.msk.f32.vlgmr.msra.gmra.mxu0 %vm756_vm6, %v540_v35  ;;  %1667 = vmatprep.subr.mxu0 %v1750_v2 }
  0x2b   : > { %1671 = vmatprep.mubr.msk.f32.mxu0 %vm1751_vm1, %v1750_v2 }
  0xda   : > { %v1851_v5 = vpop.f32.mrf.mxu0 }
  0xdb   : > { %429 = vrot.lane.b32.xlu0 %v1851_v5, %s1752_s28  ;;  %s1757_s28 = smov 120  }
  0xdc   : > { %v1618_v6 = vpop.f32.mrf.mxu0 }
  0xdf   : > { %440 = vrot.lane.b32.xlu0 %v1843_v4, %s1753_s30 }
  0xe2   : > { %v1632_v23 = vpop.f32.mrf.mxu0 }
  0xe3   : > { %vm630_vm4 = vcmp.gt.f32.partialorder %v1632_v23, 0.0 }
  0xe4   : > { %v620_v24 = vpop.f32.mrf.mxu0  ;;  %v632_v26 = vsel %vm630_vm4, 1.0, %v1750_v2 }
  0xe5   : > { %vm629_vm5 = vcmp.gt.f32.partialorder %v620_v24, 0.0  ;;  %v646_v28 = vsel %vm353_vm2, %v632_v26, 0.0 }
  0xe6   : > { %v631_v25 = vsel %vm629_vm5, 1.0, %v1750_v2 }
  0xe7   : > { %v643_v27 = vsel %vm353_vm2, %v631_v25, 0.0 }
  0xea   : > { %v907_v63 = vpop.f32.mrf.mxu0 }
  0xec   : > { %v1661_v0 = vpop.f32.mrf.mxu0 }
  0xfe   : > { %634 = vadd.xlane.f32.xlu0 %v633_v22 }
 0x102   : > { %644 = vadd.xlane.f32.xlu0 %v643_v27 }
 0x106   : > { %647 = vadd.xlane.f32.xlu0 %v646_v28 }
 0x14d   : > { %v430_v10 = vpop.permute.xlu0 %429 }
 0x14e   : > { %v432_v11 = vadd.f32 %v430_v10, %v1851_v5 }
 0x150   : > { %v433_v12 = vadd.f32 %v432_v11, %v1866_v9 }
 0x151   : > { %v441_v18 = vpop.permute.xlu0 %440 }
 0x152   : > { %v1553_v13 = vmul.f32 -1.442695, %v433_v12  ;;  %v538_v12 = vld [vmem:[%s1814_s12] sm:$0xff] }
 0x154   : > { %1712 = vpow2.f32 %v1553_v13 }
 0x161   : > { %v1713_v14 = vpop.eup %1712 }
 0x162   : > { %v437_v15 = vadd.f32 1.0, %v1713_v14 }
 0x164   : > { %1714 = vrcp.f32 %v437_v15 }
 0x171   : > { %v1889_v19 = vpop.eup %1714 }
 0x172   : > { %v443_v20 = vmul.f32 %v1889_v19, %v441_v18  ;;  %v528_v3 = vsub.f32 1.0, %v1889_v19 }
 0x174   : > { %447 = vrot.lane.b32.xlu1 %v443_v20, %s1754_s17  ;;  %v529_v7 = vmul.f32 %v528_v3, %v1843_v4  ;;  %v539_v4 = vld [vmem:[%s1814_s12 + $0x8] sm:$0xff] }
 0x187   : > { %v635_v36 = vpop.xlane.xlu0 %634 }
 0x188   : > { %vm639_vm7 = vcmp.gt.f32.partialorder %v635_v36, 0.0 }
 0x189   : > { %v641_v37 = vsel %vm639_vm7, 1.0, %v1750_v2 }
 0x18b   : > { %v645_v38 = vpop.xlane.xlu0 %644 }
 0x18c   : > { %v1940_v39 = vsub.f32 %v645_v38, %v641_v37 }
 0x18e   : > { %651 = vxpose.xlu0.b32.start [1/2] (short) (narrow) %v1940_v39, 8 }
 0x18f   : > { %v648_v46 = vpop.xlane.xlu0 %647 }
 0x1e6   : > { %v448_v21 = vpop.permute.xlu1 %447 }
 0x1e7   : > { %1624 = vmatmul.mubr.msk.f32.vlgmr.msra.gmra.mxu1 %vm353_vm2, %v448_v21 }
 0x1e8   : > { %1634 = vmatpush3.msra.mxu1 %v1871_v16  ;;  %1637 = vmatprep.mubr.msk.f32.mxu1 %vm1751_vm1, %v1750_v2 }
 0x1e9   : > { %1635 = vmatprep.subr.mxu1 %v1750_v2 }
 0x1ea   : > { %1636 = vmatpush3.msra.mxu1 %v1874_v17 }
 0x1eb   : > { %1640 = vmatprep.subr.mxu1 %v1909_v31 }
 0x2a7   : > { %v517_v29 = vpop.f32.mrf.mxu1 }
 0x2a8   : > { %522 = vrot.lane.b32.xlu1 %v517_v29, %s1755_s18 }
 0x2a9   : > { %v1625_v30 = vpop.f32.mrf.mxu1 }
 0x2cc   : > { %637 = vadd.xlane.f32.xlu1 %v636_v40 }
 0x31a   : > { %v523_v41 = vpop.permute.xlu1 %522 }
 0x31b   : > { %v525_v42 = vadd.f32 %v523_v41, %v1851_v5  ;;  %v912_v5 = vshrl.u32 %v911_v1, 7 }
 0x31d   : > { %v526_v43 = vadd.f32 %v525_v42, %v1866_v9  ;;  %v1265_v9 = vsub.s32 1, %v912_v5  ;;  %v1985_v20 = vsub.s32 0, %v912_v5 }
 0x31f   : > { %1716 = vtanh.f32 %v526_v43 }
 0x32c   : > { %v1717_v44 = vpop.eup %1716 }
 0x32d   : > { %531 = vrot.lane.b32.xlu1 %v1717_v44, %s1756_s15 }
 0x355   : > { %v638_v45 = vpop.xlane.xlu1 %637 }
 0x356   : > { %vm640_vm8 = vcmp.gt.f32.partialorder %v638_v45, 0.0 }
 0x357   : > { %v642_v47 = vsel %vm640_vm8, 1.0, %v1750_v2 }
 0x358   : > { %v1948_v48 = vsub.f32 %v648_v46, %v642_v47 }
 0x35a   : > { %652 = vxpose.xlu0.b32.end [2/2] (short) (narrow) %v1948_v48, 8  ;;  %v1013_v49 = vmin.f32 %v1940_v39, %v1948_v48  ;;  %v1022_v50 = vmax.f32 %v1940_v39, %v1948_v48 }
 0x35c   : > { %v1014_v51 = vrot.slane %v1013_v49, 4  ;;  %v1023_v52 = vrot.slane %v1022_v50, 4 }
 0x35e   : > { %v1015_v53 = vmin.f32 %v1013_v49, %v1014_v51  ;;  %v1024_v54 = vmax.f32 %v1022_v50, %v1023_v52 }
 0x360   : > { %v1016_v55 = vrot.slane %v1015_v53, 2  ;;  %v1025_v56 = vrot.slane %v1024_v54, 2 }
 0x362   : > { %v1017_v57 = vmin.f32 %v1015_v53, %v1016_v55  ;;  %v1026_v58 = vmax.f32 %v1024_v54, %v1025_v56 }
 0x364   : > { %v1018_v59 = vrot.slane %v1017_v57, 1  ;;  %v1027_v60 = vrot.slane %v1026_v58, 1 }
 0x366   : > { %v1019_v61 = vmin.f32 %v1017_v57, %v1018_v59  ;;  %v1028_v62 = vmax.f32 %v1026_v58, %v1027_v60 }
 0x368   : > { %1684 = vpush %v1019_v61 }
 0x369   : > { %1686 = vpush %v1028_v62 }
 0x399   : > { %s1685_s12 = spop %1684 }
 0x39a   : > { %s1687_s30 = spop %1686  ;;  %v1021_v52 = vstv %s1685_s12 }
 0x39b   : > { %v1030_v53 = vstv %s1687_s30  ;;  %v1031_v56 = vsub.f32 %v1940_v39, %v1021_v52  ;;  %v1032_v57 = vsub.f32 %v1948_v48, %v1021_v52 }
 0x39c   : > { %v1033_v54 = vsub.f32 %v1030_v53, %v1021_v52 }
 0x39e   : > { %1718 = vrcp.f32 %v1033_v54 }
 0x39f   : > { %v532_v6 = vpop.permute.xlu1 %531 }
 0x3a0   : > { %v534_v8 = vmul.f32 %v1889_v19, %v532_v6 }
 0x3a2   : > { %v535_v10 = vadd.f32 %v534_v8, %v529_v7 }
 0x3a4   : > { %537 = vst.msk [vmem:[#allocation2] sm:$0x3] %vm536_vm9, %v535_v10  ;;  %924 = vrot.lane.b32.xlu1 %v535_v10, %s1757_s28  ;;  %v1959_v11 = vrot.slane %v535_v10, %v1265_v9  ;;  %v1190_v15 = vrot.slane %v535_v10, 1  ;;  %v914_v21 = vrot.slane %v535_v10, %v1985_v20 }
 0x3ab   : > { %v1719_v55 = vpop.eup %1718 }
 0x3ac   : > { %v1035_v58 = vmul.f32 %v1719_v55, %v1031_v56  ;;  %v1036_v59 = vmul.f32 %v1719_v55, %v1032_v57 }
 0x3d2   : > { %v667_v13 = vpop.trf.xlu0 }
 0x3d3   : > { %1638 = vmatmul.mubr.msk.f32.vlgmr.msra.gmra.mxu1 %vm353_vm2, %v667_v13 }
 0x3d4   : > { %1641 = vmatpush3.msra.mxu1 %v1909_v31  ;;  %1648 = vmatprep.mubr.msk.f32.mxu1 %vm756_vm6, %v538_v12 }
 0x3d5   : > { %1642 = vmatprep.subr.mxu1 %v1914_v32 }
 0x3d6   : > { %1643 = vmatpush3.msra.mxu1 %v1914_v32 }
 0x3d7   : > { %1644 = vmatprep.subr.mxu1 %v1922_v33 }
 0x3d8   : > { %1645 = vmatpush3.msra.mxu1 %v1922_v33 }
 0x3d9   : > { %1646 = vmatprep.subr.mxu1 %v1929_v34 }
 0x3da   : > { %1647 = vmatpush3.msra.mxu1 %v1929_v34 }
 0x3db   : > { %1649 = vmatmul.mubr.msk.f32.vlgmr.msra.gmra.mxu1 %vm756_vm6, %v539_v4  ;;  %1662 = vmatprep.subr.mxu1 %v1750_v2 }
 0x3dc   : > { %1663 = vmatpush3.xpose.msk.msra.mxu1 %vm547_vm3, %v907_v63  ;;  %1664 = vmatprep.mubr.msk.f32.mxu1 %vm1751_vm1, %v1750_v2 }
 0x3dd   : > { %1674 = vmatprep.subr.mxu1 %v1750_v2 }
 0x416   : > { %v925_v14 = vpop.permute.xlu1 %924 }
 0x417   : > { %1665 = vmatmul.mubr.msk.f32.vlgmr.msra.gmra.mxu1 %vm547_vm3, %v925_v14 }
 0x418   : > { %1675 = vmatpush3.xpose.msk.msra.mxu1 %vm547_vm3, %v907_v63  ;;  %1676 = vmatprep.mubr.msk.f32.mxu1 %vm1751_vm1, %v1750_v2 }
 0x41b   : > { %1677 = vmatmul.mubr.msk.f32.vlgmr.msra.gmra.mxu1 %vm547_vm3, %v1190_v15 }
 0x493   : > { %v1983_v18 = vpop.f32.mrf.mxu1 }
 0x495   : > { %v1639_v19 = vpop.f32.mrf.mxu1 }
 0x496   : > { %v1292_v19 = vsel %vm1291_vm14, %v1983_v18, inf }
 0x49b   : > { %v1988_v22 = vpop.f32.mrf.mxu1 }
 0x49c   : > { %1668 = vmatpush3.msra.mxu0 %v1988_v22  ;;  %v916_v23 = vmul.f32 %v1988_v22, %v914_v21 }
 0x49d   : > { %v1992_v24 = vpop.f32.mrf.mxu1  ;;  %1669 = vmatprep.subr.mxu0 %v1750_v2 }
 0x49e   : > { %1670 = vmatpush3.msra.mxu0 %v1992_v24  ;;  %v920_v25 = vsel %vm547_vm3, %v916_v23, 0.0  ;;  %v915_v26 = vmul.f32 %v914_v21, %v1992_v24  ;;  %v1303_v23 = vsel %vm1291_vm14, %v1983_v18, -inf }
 0x49f   : > { %921 = vadd.xlane.f32.xlu0 %v920_v25 }
 0x4a0   : > { %v917_v27 = vsel %vm547_vm3, %v915_v26, 0.0 }
 0x4a1   : > { %918 = vadd.xlane.f32.xlu1 %v917_v27 }
 0x4d7   : > { %v997_v28 = vpop.f32.mrf.mxu1 }
 0x4d8   : > { %v1004_v32 = vrot.slane %v997_v28, %v1985_v20 }
 0x4d9   : > { %v1666_v29 = vpop.f32.mrf.mxu1 }
 0x4db   : > { %v1999_v30 = vpop.f32.mrf.mxu1 }
 0x4dd   : > { %v1678_v31 = vpop.f32.mrf.mxu1 }
 0x4de   : > { %v1282_v31 = vrot.slane %v1999_v30, %v1985_v20 }
 0x528   : > { %v922_v33 = vpop.xlane.xlu0 %921 }
 0x529   : > { %v1006_v34 = vadd.f32 %v1004_v32, %v922_v33 }
 0x52a   : > { %v919_v2 = vpop.xlane.xlu1 %918 }
 0x52b   : > { %vm1008_vm10 = vcmp.gt.f32.partialorder %v1006_v34, 0.0  ;;  %v1010_v35 = vmul.f32 0.2, %v1006_v34  ;;  %v1005_v36 = vadd.f32 %v1004_v32, %v919_v2 }
 0x52d   : > { %vm1007_vm11 = vcmp.gt.f32.partialorder %v1005_v36, 0.0  ;;  %v1009_v37 = vmul.f32 0.2, %v1005_v36  ;;  %v1012_v38 = vsel %vm1008_vm10, %v1006_v34, %v1010_v35 }
 0x52e   : > { %v1038_v42 = vsel %vm547_vm3, %v1012_v38, -inf }
 0x52f   : > { %v1011_v40 = vsel %vm1007_vm11, %v1005_v36, %v1009_v37 }
 0x530   : > { %v1037_v41 = vsel %vm547_vm3, %v1011_v40, -inf }
 0x531   : > { %v1039_v43 = vmax.f32 %v1037_v41, %v1038_v42 }
 0x533   : > { %1040 = vmax.xlane.f32.xlu1 %v1039_v43 }
 0x5bc   : > { %v1041_v44 = vpop.xlane.xlu1 %1040 }
 0x5bd   : > { %v1042_v45 = vrot.slane %v1041_v44, 4 }
 0x5bf   : > { %v1043_v46 = vmax.f32 %v1041_v44, %v1042_v45 }
 0x5c1   : > { %v1044_v47 = vrot.slane %v1043_v46, 2 }
 0x5c3   : > { %v1045_v49 = vmax.f32 %v1043_v46, %v1044_v47 }
 0x5c5   : > { %v1046_v50 = vrot.slane %v1045_v49, 1 }
 0x5c7   : > { %v1047_v51 = vmax.f32 %v1045_v49, %v1046_v50 }
 0x5c9   : > { %1688 = vpush %v1047_v51 }
 0x5fa   : > { %s1689_s9 = spop %1688 }
 0x5fb   : > { %v1049_v60 = vstv %s1689_s9 }
 0x5fc   : > { %v1050_v61 = vmul.f32 %v1049_v60, %v1035_v58  ;;  %v1051_v62 = vmul.f32 %v1049_v60, %v1036_v59 }
 0x5fe   : > { %v1054_v63 = vadd.f32 %v1050_v61, %v1011_v40  ;;  %v1055_v0 = vadd.f32 %v1051_v62, %v1012_v38 }
 0x600   : > { %v1056_v1 = vsel %vm1052_vm12, %v1054_v63, -1e+12  ;;  %v1057_v39 = vsel %vm1053_vm13, %v1055_v0, -1e+12 }
 0x601   : > { %v1058_v3 = vsel %vm547_vm3, %v1056_v1, -inf  ;;  %v1061_v48 = vsel %vm547_vm3, %v1057_v39, -inf }
 0x602   : > { %1059 = vmax.xlane.f32.xlu1 %v1058_v3 }
 0x606   : > { %1062 = vmax.xlane.f32.xlu1 %v1061_v48 }
 0x617   : > { %1268 = vrot.lane.b32.xlu1 %v1959_v11, %s1757_s28 }
 0x68b   : > { %v1060_v5 = vpop.xlane.xlu1 %1059 }
 0x68c   : > { %v1064_v6 = vsub.f32 %v1056_v1, %v1060_v5 }
 0x68e   : > { %v1066_v7 = vmul.f32 1.442695, %v1064_v6 }
 0x68f   : > { %v1063_v8 = vpop.xlane.xlu1 %1062 }
 0x690   : > { %1720 = vpow2.f32 %v1066_v7  ;;  %v1065_v9 = vsub.f32 %v1057_v39, %v1063_v8 }
 0x692   : > { %v1068_v10 = vmul.f32 1.442695, %v1065_v9 }
 0x693   : > { %v1269_v4 = vpop.permute.xlu1 %1268 }
 0x694   : > { %1722 = vpow2.f32 %v1068_v10  ;;  %v1271_v15 = vmul.f32 %v1269_v4, %v1992_v24  ;;  %v1272_v21 = vmul.f32 %v1988_v22, %v1269_v4 }
 0x696   : > { %v1273_v25 = vsel %vm547_vm3, %v1271_v15, 0.0  ;;  %v1276_v26 = vsel %vm547_vm3, %v1272_v21, 0.0 }
 0x69d   : > { %v1721_v12 = vpop.eup %1720 }
 0x69e   : > { %v1070_v13 = vsel %vm547_vm3, %v1721_v12, 0.0 }
 0x69f   : > { %1071 = vadd.xlane.f32.xlu1 %v1070_v13 }
 0x6a1   : > { %v1723_v14 = vpop.eup %1722 }
 0x6a2   : > { %v1073_v11 = vsel %vm547_vm3, %v1723_v14, 0.0 }
 0x6a3   : > { %1293 = vmin.xlane.f32.xlu1 %v1292_v19  ;;  %1074 = vadd.xlane.f32.xlu0 %v1073_v11 }
 0x6a7   : > { %1304 = vmax.xlane.f32.xlu1 %v1303_v23  ;;  %1274 = vadd.xlane.f32.xlu0 %v1273_v25 }
 0x6ab   : > { %1277 = vadd.xlane.f32.xlu0 %v1276_v26 }
 0x728   : > { %v1072_v27 = vpop.xlane.xlu1 %1071 }
 0x729   : > { %1724 = vrcp.f32 %v1072_v27 }
 0x72c   : > { %v1075_v24 = vpop.xlane.xlu0 %1074  ;;  %v1294_v28 = vpop.xlane.xlu1 %1293 }
 0x72d   : > { %1726 = vrcp.f32 %v1075_v24  ;;  %v1295_v29 = vrot.slane %v1294_v28, 4 }
 0x72f   : > { %v1296_v32 = vmin.f32 %v1294_v28, %v1295_v29 }
 0x730   : > { %v1275_v22 = vpop.xlane.xlu0 %1274  ;;  %v1305_v33 = vpop.xlane.xlu1 %1304 }
 0x731   : > { %v1297_v34 = vrot.slane %v1296_v32, 2  ;;  %v1283_v2 = vadd.f32 %v1282_v31, %v1275_v22  ;;  %v1306_v35 = vrot.slane %v1305_v33, 4 }
 0x733   : > { %vm1285_vm15 = vcmp.gt.f32.partialorder %v1283_v2, 0.0  ;;  %v1287_v36 = vmul.f32 0.2, %v1283_v2  ;;  %v1307_v37 = vmax.f32 %v1305_v33, %v1306_v35  ;;  %v1298_v38 = vmin.f32 %v1296_v32, %v1297_v34 }
 0x734   : > { %v1278_v40 = vpop.xlane.xlu0 %1277 }
 0x735   : > { %v1308_v41 = vrot.slane %v1307_v37, 2  ;;  %v1284_v42 = vadd.f32 %v1282_v31, %v1278_v40  ;;  %v1299_v43 = vrot.slane %v1298_v38, 1  ;;  %v1289_v45 = vsel %vm1285_vm15, %v1283_v2, %v1287_v36 }
 0x736   : > { %v1725_v44 = vpop.eup %1724  ;;  %v1318_v52 = vsel %vm547_vm3, %v1289_v45, -inf }
 0x737   : > { %vm1286_vm0 = vcmp.gt.f32.partialorder %v1284_v42, 0.0  ;;  %v1288_v46 = vmul.f32 0.2, %v1284_v42  ;;  %v1078_v47 = vmul.f32 %v1725_v44, %v1721_v12  ;;  %v1300_v30 = vmin.f32 %v1298_v38, %v1299_v43 }
 0x738   : > { %v1309_v49 = vmax.f32 %v1307_v37, %v1308_v41 }
 0x739   : > { %1080 = vxpose.xlu0.b32.start [1/2] (short) (narrow) %v1078_v47, 8  ;;  %1690 = vpush %v1300_v30  ;;  %v1290_v50 = vsel %vm1286_vm0, %v1284_v42, %v1288_v46 }
 0x73a   : > { %v1727_v51 = vpop.eup %1726  ;;  %v1319_v53 = vsel %vm547_vm3, %v1290_v50, -inf  ;;  %v1310_v54 = vrot.slane %v1309_v49, 1 }
 0x73b   : > { %v1320_v55 = vmax.f32 %v1318_v52, %v1319_v53  ;;  %v1079_v56 = vmul.f32 %v1727_v51, %v1723_v14 }
 0x73c   : > { %v1311_v57 = vmax.f32 %v1309_v49, %v1310_v54 }
 0x73d   : > { %1321 = vmax.xlane.f32.xlu1 %v1320_v55  ;;  %1081 = vxpose.xlu0.b32.end [2/2] (short) (narrow) %v1079_v56, 8 }
 0x73e   : > { %1692 = vpush %v1311_v57 }
 0x76a   : > { %s1691_s10 = spop %1690 }
 0x76b   : > { %v1302_v39 = vstv %s1691_s10 }
 0x76c   : > { %v1314_v6 = vsub.f32 %v1983_v18, %v1302_v39 }
 0x76f   : > { %s1693_s11 = spop %1692 }
 0x770   : > { %v1313_v3 = vstv %s1693_s11 }
 0x771   : > { %v1315_v48 = vsub.f32 %v1313_v3, %v1302_v39 }
 0x773   : > { %1728 = vrcp.f32 %v1315_v48 }
 0x780   : > { %v1729_v5 = vpop.eup %1728 }
 0x781   : > { %v1317_v7 = vmul.f32 %v1729_v5, %v1314_v6 }
 0x7b5   : > { %v1096_v58 = vpop.trf.xlu0 }
 0x7b6   : > { %1672 = vmatmul.mubr.msk.f32.vlgmr.msra.gmra.mxu0 %vm353_vm2, %v1096_v58 }
 0x7c6   : > { %v1322_v59 = vpop.xlane.xlu1 %1321 }
 0x7c7   : > { %v1323_v60 = vrot.slane %v1322_v59, 4 }
 0x7c9   : > { %v1324_v61 = vmax.f32 %v1322_v59, %v1323_v60 }
 0x7cb   : > { %v1325_v62 = vrot.slane %v1324_v61, 2 }
 0x7cd   : > { %v1326_v63 = vmax.f32 %v1324_v61, %v1325_v62 }
 0x7cf   : > { %v1327_v0 = vrot.slane %v1326_v63, 1 }
 0x7d1   : > { %v1328_v1 = vmax.f32 %v1326_v63, %v1327_v0 }
 0x7d3   : > { %1694 = vpush %v1328_v1 }
 0x804   : > { %s1695_s13 = spop %1694 }
 0x805   : > { %v1330_v8 = vstv %s1695_s13 }
 0x806   : > { %v1331_v9 = vmul.f32 %v1330_v8, %v1317_v7 }
 0x808   : > { %v1335_v10 = vrot.slane %v1331_v9, %v1985_v20 }
 0x80a   : > { %v1336_v12 = vadd.f32 %v1335_v10, %v1289_v45  ;;  %v1337_v13 = vadd.f32 %v1335_v10, %v1290_v50 }
 0x80c   : > { %v1338_v4 = vsel %vm1052_vm12, %v1336_v12, -1e+12  ;;  %v1339_v14 = vsel %vm1053_vm13, %v1337_v13, -1e+12 }
 0x80d   : > { %v1340_v15 = vsel %vm547_vm3, %v1338_v4, -inf  ;;  %v1341_v19 = vsel %vm547_vm3, %v1339_v14, -inf }
 0x80e   : > { %v1342_v11 = vmax.f32 %v1340_v15, %v1341_v19 }
 0x810   : > { %v1343_v18 = vrot.slane %v1342_v11, 4 }
 0x812   : > { %v1344_v21 = vmax.f32 %v1342_v11, %v1343_v18 }
 0x814   : > { %v1345_v23 = vrot.slane %v1344_v21, 2 }
 0x816   : > { %v1346_v25 = vmax.f32 %v1344_v21, %v1345_v23 }
 0x818   : > { %v1347_v26 = vrot.slane %v1346_v25, 1 }
 0x81a   : > { %v1348_v27 = vmax.f32 %v1346_v25, %v1347_v26 }
 0x81c   : > { %v1349_v20 = vsub.f32 %v1338_v4, %v1348_v27  ;;  %v1350_v24 = vsub.f32 %v1339_v14, %v1348_v27 }
 0x81e   : > { %v1351_v28 = vmul.f32 1.442695, %v1349_v20  ;;  %v1353_v29 = vmul.f32 1.442695, %v1350_v24 }
 0x820   : > { %1730 = vpow2.f32 %v1351_v28 }
 0x821   : > { %1732 = vpow2.f32 %v1353_v29 }
 0x82d   : > { %v1731_v17 = vpop.eup %1730 }
 0x82e   : > { %v1733_v16 = vpop.eup %1732  ;;  %v1355_v31 = vsel %vm547_vm3, %v1731_v17, 0.0 }
 0x82f   : > { %v1356_v32 = vsel %vm547_vm3, %v1733_v16, 0.0 }
 0x830   : > { %v1357_v22 = vadd.f32 %v1356_v32, %v1355_v31 }
 0x832   : > { %v1358_v33 = vrot.slane %v1357_v22, 4 }
 0x834   : > { %v1359_v34 = vadd.f32 %v1358_v33, %v1357_v22 }
 0x836   : > { %v1360_v2 = vrot.slane %v1359_v34, 2 }
 0x838   : > { %v1361_v35 = vadd.f32 %v1360_v2, %v1359_v34 }
 0x83a   : > { %v1362_v36 = vrot.slane %v1361_v35, 1 }
 0x83c   : > { %v1363_v37 = vadd.f32 %v1362_v36, %v1361_v35 }
 0x83e   : > { %1734 = vrcp.f32 %v1363_v37 }
 0x84b   : > { %v1735_v38 = vpop.eup %1734 }
 0x84c   : > { %v1365_v40 = vmul.f32 %v1735_v38, %v1731_v17  ;;  %v1366_v41 = vmul.f32 %v1735_v38, %v1733_v16 }
 0x84e   : > { %1681 = vmatprep.mubr.msk.f32.mxu0 %vm547_vm3, %v1365_v40 }
 0x876   : > { %v1181_v42 = vpop.f32.mrf.mxu0 }
 0x877   : > { %v1186_v43 = vmul.f32 1.442695, %v1181_v42  ;;  %vm1185_vm1 = vcmp.gt.f32.partialorder %v1181_v42, 0.0 }
 0x878   : > { %v1673_v44 = vpop.f32.mrf.mxu0 }
 0x879   : > { %1736 = vpow2.f32 %v1186_v43 }
 0x886   : > { %v1737_v45 = vpop.eup %1736 }
 0x887   : > { %v1566_v46 = vadd.f32 -1.0, %v1737_v45 }
 0x889   : > { %v1189_v47 = vsel %vm1185_vm1, %v1181_v42, %v1566_v46 }
 0x88a   : > { %1679 = vmatprep.subr.mxu0 %v1189_v47 }
 0x88b   : > { %1680 = vmatpush3.msra.mxu0 %v1189_v47 }
 0x88c   : > { %1682 = vmatmul.mubr.msk.f32.vlgmr.msra.gmra.mxu0 %vm547_vm3, %v1366_v41 }
 0x94c   : > { %v1683_v30 = vpop.f32.mrf.mxu0 }
 0x94d   : > { %v1452_v49 = vmul.f32 1.442695, %v1683_v30  ;;  %vm1449_vm2 = vcmp.gt.f32.partialorder %v1683_v30, 0.0 }
 0x94e   : > { %v1439_v50 = vpop.f32.mrf.mxu0 }
 0x94f   : > { %1738 = vpow2.f32 %v1452_v49  ;;  %v1450_v51 = vmul.f32 1.442695, %v1439_v50  ;;  %vm1448_vm4 = vcmp.gt.f32.partialorder %v1439_v50, 0.0 }
 0x951   : > { %1740 = vpow2.f32 %v1450_v51 }
 0x95c   : > { %v1739_v52 = vpop.eup %1738 }
 0x95d   : > { %v1572_v53 = vadd.f32 -1.0, %v1739_v52 }
 0x95e   : > { %v1741_v54 = vpop.eup %1740 }
 0x95f   : > { %v1457_v55 = vsel %vm1449_vm2, %v1683_v30, %v1572_v53  ;;  %v1571_v56 = vadd.f32 -1.0, %v1741_v54 }
 0x960   : > { %1459 = vst.msk [vmem:[%s1829_s21 + $0x8] sm:$0xff] %vm547_vm3, %v1457_v55 }
 0x961   : > { %v1456_v57 = vsel %vm1448_vm4, %v1439_v50, %v1571_v56 }
 0x962   : > { %1458 = vst.msk [vmem:[%s1829_s21] sm:$0xff] %vm547_vm3, %v1456_v57 }
 0x963 PF: > { %s18_s27 = sadd.s32 1, %s1748_s27  }
 0x964   : > { %p15_p5 = scmp.ge.s32.totalorder %s18_s27, 5  }
 0x966   :  { %17 = sbr.rel (!%p15_p5) target bundleno = 1 (0x1), region = 92 }

</bundles_post_ra>
